<compile_context>
chip_gen: v7x
topology: tpu7x:2x2x1
jax: 0.10.0
libtpu: 0.0.40
codegen_flags: <defaults>
</compile_context>

<pallas_src>
import jax
import jax.numpy as jnp
from jax import lax
from jax.experimental import pallas as pl
from jax.experimental.pallas import tpu as pltpu


def _round_up(x, m):
    return ((x + m - 1) // m) * m


def _ceil_div(a, b):
    return -(-a // b)


def _vmem_capacity_bytes():
    try:
        return int(pltpu.get_tpu_info().vmem_capacity_bytes)
    except Exception:
        return 64 * 1024 * 1024  # conservative (v7x-sized) fallback


def _make_wce_kernel(n_rows, tile_n, steps_per_slice):
    """Kernel closure over static sizes (n_rows, tile_n, steps_per_slice)."""

    def kernel(logits_ref, targets_ref, sw_ref, out_ref, acc_ref):
        i = pl.program_id(1)

        @pl.when(i == 0)
        def _init():
            acc_ref[0] = jnp.float32(0.0)  # numerator:   sum_i w[y_i]*(lse_i - x_i[y_i])
            acc_ref[1] = jnp.float32(0.0)  # denominator: sum_i w[y_i]

        logits = logits_ref[...].astype(jnp.float32)   # (tile_n, C)
        tgt = targets_ref[...]                          # (tile_n, 1) int32
        w_row = sw_ref[...].astype(jnp.float32)         # (tile_n, 1) f32 = w[y_i]

        # Valid-row mask from the LOGICAL block index (handles the partial last block and
        # any over-provisioned, index-map-clamped blocks: their rows are all >= n_rows).
        block_idx = pl.program_id(0) * steps_per_slice + i
        rows = block_idx * tile_n + lax.broadcasted_iota(jnp.int32, (tile_n, 1), 0)
        valid = rows < n_rows

        # Kill garbage rows before any math so no NaN/Inf can leak into the sums.
        logits = jnp.where(valid, logits, jnp.float32(0.0))
        w_row = jnp.where(valid, w_row, jnp.float32(0.0))

        # Numerically stable log-sum-exp over the class axis.
        m = jnp.max(logits, axis=-1, keepdims=True)
        lse = m + jnp.log(jnp.sum(jnp.exp(logits - m), axis=-1, keepdims=True))

        # Picked logit x_i[y_i]: one masked lane reduction (no float one-hot, no matmul).
        class_ids = lax.broadcasted_iota(jnp.int32, logits.shape, 1)
        picked = jnp.sum(jnp.where(class_ids == tgt, logits, jnp.float32(0.0)),
                         axis=-1, keepdims=True)

        acc_ref[0] += jnp.sum(w_row * (lse - picked))
        acc_ref[1] += jnp.sum(w_row)

        @pl.when(i == pl.num_programs(1) - 1)
        def _finalize():
            r = lax.broadcasted_iota(jnp.int32, (1, 8, 128), 1)
            c = lax.broadcasted_iota(jnp.int32, (1, 8, 128), 2)
            num = acc_ref[0]
            den = acc_ref[1]
            out_ref[...] = jnp.where((r == 0) & (c == 0), num,
                                     jnp.where((r == 0) & (c == 1), den,
                                               jnp.float32(0.0)))

    return kernel


def weighted_cross_entropy_loss(logits, targets, class_weights, *,
                                num_slices=2, tile_n=None):
    """logits: (N, C) f32/bf16, targets: (N,) int, class_weights: (C,) float -> scalar f32."""
    n, c = logits.shape

    # Keep bf16 logits bf16 through HBM/DMA; upcast to f32 inside the kernel.
    if logits.dtype not in (jnp.float32, jnp.bfloat16):
        logits = logits.astype(jnp.float32)
    itemsize = jnp.dtype(logits.dtype).itemsize

    targets = targets.astype(jnp.int32)
    # Per-sample weights precomputed with a tiny N-element gather (plain JAX).
    sample_w = class_weights.astype(jnp.float32)[targets]
    targets_2d = targets.reshape(n, 1)
    sample_w_2d = sample_w.reshape(n, 1)

    # --- tile sizing: byte-targeted, generation-aware ---
    vmem_cap = _vmem_capacity_bytes()
    c_lane = max(128, _round_up(c, 128))                  # VMEM lane padding of the logits block
    per_row_vmem = c_lane * itemsize + 2 * 128 * 4        # logits + targets + sample_w per row
    per_buf_budget = min(16 * 1024 * 1024, vmem_cap // 5)  # one pipelining buffer's footprint
    if tile_n is None:
        tile_by_vmem = max(8, per_buf_budget // per_row_vmem)
        tile_by_hbm = max(8, (8 * 1024 * 1024) // max(1, c * itemsize))
        rows_per_slice = _round_up(_ceil_div(n, num_slices), 8)
        tile_n = min(tile_by_vmem, tile_by_hbm, rows_per_slice)
    tile_n = max(8, (int(tile_n) // 8) * 8)
    # TODO(synk): for vocab-scale C a second grid axis over classes with a streaming
    # (flash-style) LSE would be needed; not required for this module's C=4.

    total_blocks = _ceil_div(n, tile_n)
    steps_per_slice = _ceil_div(total_blocks, num_slices)
    max_block = total_blocks - 1

    def row_block_map(p, i):
        # Clamp over-provisioned logical blocks to the last real block (no OOB DMA);
        # the kernel masks their rows out via the logical row index.
        return (jnp.minimum(p * steps_per_slice + i, max_block), 0)

    logits_buf = tile_n * c_lane * itemsize
    side_buf = 2 * tile_n * 128 * 4
    needed = 2 * (logits_buf + side_buf) + 2 * (8 * 128 * 4) + (2 << 20)
    vmem_limit = int(min(vmem_cap, max(needed, 8 << 20)))

    kernel = _make_wce_kernel(n, tile_n, steps_per_slice)

    out = pl.pallas_call(
        kernel,
        out_shape=jax.ShapeDtypeStruct((num_slices, 8, 128), jnp.float32),
        grid_spec=pltpu.PrefetchScalarGridSpec(
            num_scalar_prefetch=0,
            grid=(num_slices, steps_per_slice),
            in_specs=[
                pl.BlockSpec((tile_n, c), row_block_map),   # class axis NOT padded
                pl.BlockSpec((tile_n, 1), row_block_map),
                pl.BlockSpec((tile_n, 1), row_block_map),
            ],
            out_specs=pl.BlockSpec((1, 8, 128), lambda p, i: (p, 0, 0)),
            scratch_shapes=[pltpu.SMEM((2,), jnp.float32)],
        ),
        compiler_params=pltpu.CompilerParams(
            dimension_semantics=("parallel", "arbitrary"),
            vmem_limit_bytes=vmem_limit,
        ),
    )(logits, targets_2d, sample_w_2d)

    num = jnp.sum(out[:, 0, 0])
    den = jnp.sum(out[:, 0, 1])
    # Matches PyTorch: total sample weight 0 -> NaN (0/0).
    return (num / den).astype(jnp.float32)


def calculate_class_weights_from_counts(class_counts):
    # Mirrors calculate_class_weights(): total / (num_classes * counts).
    # TODO(synk): the PyTorch version iterates a host-side data_loader; here we take the
    # per-class counts directly (deterministic synthetic counts in __main__).
    class_counts = jnp.asarray(class_counts, dtype=jnp.float32)
    total = jnp.sum(class_counts)
    return (total / (class_counts.shape[0] * class_counts)).astype(jnp.float32)


if __name__ == "__main__":
    key = jax.random.PRNGKey(0)
    k_logits, k_targets = jax.random.split(key)

    # 4 classes (fixed by the spec); N=21 exercises the partial last block, the clamped
    # over-provisioned block on slice 1, and the two-slice parallel axis.
    N, C = 21, 4
    logits = jax.random.normal(k_logits, (N, C), dtype=jnp.float32)
    targets = jax.random.randint(k_targets, (N,), 0, C, dtype=jnp.int32)

    # Deterministic synthetic class counts (in lieu of iterating a data_loader).
    class_counts = [10.0, 20.0, 30.0, 40.0]
    class_weights = calculate_class_weights_from_counts(class_counts)

    # Reference (plain JAX).
    logZ = jax.scipy.special.logsumexp(logits, axis=-1)
    picked = logits[jnp.arange(N), targets]
    w_i = class_weights[targets]
    ref = jnp.sum(w_i * (logZ - picked)) / jnp.sum(w_i)

    # Auto-sized tiles (production path).
    loss = weighted_cross_entropy_loss(logits, targets, class_weights)
    loss = jax.block_until_ready(loss)
    assert jnp.allclose(loss, ref, rtol=1e-5, atol=1e-5), (loss, ref)

    # Small explicit tile to exercise multi-step accumulation + clamped block path.
    loss_small = weighted_cross_entropy_loss(logits, targets, class_weights, tile_n=8)
    loss_small = jax.block_until_ready(loss_small)
    assert jnp.allclose(loss_small, ref, rtol=1e-5, atol=1e-5), (loss_small, ref)

    print("KERNEL_OK")
</pallas_src>

<mosaic_0001>
module attributes {stable_mosaic.version = 11 : i64} {
  func.func @kernel(%arg0: i32, %arg1: i32, %arg2: memref<16x4xf32, #tpu.memory_space<vmem>>, %arg3: memref<16x1xi32, #tpu.memory_space<vmem>>, %arg4: memref<16x1xf32, #tpu.memory_space<vmem>>, %arg5: memref<1x8x128xf32, #tpu.memory_space<vmem>>, %arg6: memref<2xf32, #tpu.memory_space<smem>>) attributes {dimension_semantics = [#tpu.dimension_semantics<parallel>, #tpu.dimension_semantics<arbitrary>], iteration_bounds = array<i64: 2, 1>, scalar_prefetch = 0 : i64, scratch_operands = 1 : i64, tpu.core_type = #tpu.core_type<tc>, window_params = [{transform_indices = @transform_0, window_bounds = array<i64: 16, 4>}, {transform_indices = @transform_1, window_bounds = array<i64: 16, 1>}, {transform_indices = @transform_2, window_bounds = array<i64: 16, 1>}, {transform_indices = @transform_3, window_bounds = array<i64: 1, 8, 128>}]} {
    %c0_i32 = arith.constant 0 : i32
    %0 = arith.cmpi eq, %arg1, %c0_i32 : i32
    %1 = arith.extui %0 : i1 to i32
    %c0_i32_0 = arith.constant 0 : i32
    %2 = arith.cmpi ne, %1, %c0_i32_0 : i32
    scf.if %2 {
      %cst_18 = arith.constant 0.000000e+00 : f32
      %c0_19 = arith.constant 0 : index
      %55 = memref.load %arg6[%c0_19] : memref<2xf32, #tpu.memory_space<smem>>
      memref.store %cst_18, %arg6[%c0_19] : memref<2xf32, #tpu.memory_space<smem>>
      %cst_20 = arith.constant 0.000000e+00 : f32
      %c1_21 = arith.constant 1 : index
      %56 = memref.load %arg6[%c1_21] : memref<2xf32, #tpu.memory_space<smem>>
      memref.store %cst_20, %arg6[%c1_21] : memref<2xf32, #tpu.memory_space<smem>>
    } else {
    }
    %c0 = arith.constant 0 : index
    %c0_1 = arith.constant 0 : index
    %3 = vector.load %arg2[%c0, %c0_1] : memref<16x4xf32, #tpu.memory_space<vmem>>, vector<16x4xf32>
    %c0_2 = arith.constant 0 : index
    %c0_3 = arith.constant 0 : index
    %4 = vector.load %arg3[%c0_2, %c0_3] : memref<16x1xi32, #tpu.memory_space<vmem>>, vector<16x1xi32>
    %c0_4 = arith.constant 0 : index
    %c0_5 = arith.constant 0 : index
    %5 = vector.load %arg4[%c0_4, %c0_5] : memref<16x1xf32, #tpu.memory_space<vmem>>, vector<16x1xf32>
    %c1_i32 = arith.constant 1 : i32
    %6 = arith.muli %arg0, %c1_i32 : i32
    %7 = arith.addi %6, %arg1 : i32
    %c16_i32 = arith.constant 16 : i32
    %8 = arith.muli %7, %c16_i32 : i32
    %9 = tpu.iota {dimensions = array<i32: 0>} : vector<16x1xi32>
    %10 = vector.broadcast %8 : i32 to vector<16x1xi32>
    %11 = arith.addi %10, %9 : vector<16x1xi32>
    %c21_i32 = arith.constant 21 : i32
    %12 = vector.broadcast %c21_i32 : i32 to vector<16x1xi32>
    %13 = arith.cmpi slt, %11, %12 : vector<16x1xi32>
    %cst = arith.constant 0.000000e+00 : f32
    %14 = vector.shape_cast %13 : vector<16x1xi1> to vector<16x1xi1>
    %15 = vector.broadcast %14 : vector<16x1xi1> to vector<16x4xi1>
    %16 = vector.broadcast %cst : f32 to vector<16x4xf32>
    %17 = arith.select %15, %3, %16 : vector<16x4xi1>, vector<16x4xf32>
    %cst_6 = arith.constant 0.000000e+00 : f32
    %18 = vector.broadcast %cst_6 : f32 to vector<16x1xf32>
    %19 = arith.select %13, %5, %18 : vector<16x1xi1>, vector<16x1xf32>
    %cst_7 = arith.constant dense<0xFF800000> : vector<16xf32>
    %20 = vector.multi_reduction <maximumf>, %17, %cst_7 [1] : vector<16x4xf32> to vector<16xf32>
    %21 = vector.shape_cast %20 : vector<16xf32> to vector<16x1xf32>
    %22 = vector.broadcast %21 : vector<16x1xf32> to vector<16x4xf32>
    %23 = arith.subf %17, %22 : vector<16x4xf32>
    %24 = math.exp %23 : vector<16x4xf32>
    %cst_8 = arith.constant dense<0.000000e+00> : vector<16xf32>
    %25 = vector.multi_reduction <add>, %24, %cst_8 [1] : vector<16x4xf32> to vector<16xf32>
    %26 = vector.shape_cast %25 : vector<16xf32> to vector<16x1xf32>
    %27 = math.log %26 : vector<16x1xf32>
    %28 = arith.addf %21, %27 : vector<16x1xf32>
    %29 = tpu.iota {dimensions = array<i32: 1>} : vector<16x4xi32>
    %30 = vector.broadcast %4 : vector<16x1xi32> to vector<16x4xi32>
    %31 = arith.cmpi eq, %29, %30 : vector<16x4xi32>
    %cst_9 = arith.constant 0.000000e+00 : f32
    %32 = vector.broadcast %cst_9 : f32 to vector<16x4xf32>
    %33 = arith.select %31, %17, %32 : vector<16x4xi1>, vector<16x4xf32>
    %cst_10 = arith.constant dense<0.000000e+00> : vector<16xf32>
    %34 = vector.multi_reduction <add>, %33, %cst_10 [1] : vector<16x4xf32> to vector<16xf32>
    %35 = vector.shape_cast %34 : vector<16xf32> to vector<16x1xf32>
    %c0_11 = arith.constant 0 : index
    %36 = memref.load %arg6[%c0_11] : memref<2xf32, #tpu.memory_space<smem>>
    %37 = arith.subf %28, %35 : vector<16x1xf32>
    %38 = arith.mulf %19, %37 : vector<16x1xf32>
    %39 = vector.shape_cast %38 : vector<16x1xf32> to vector<1x16x1xf32>
    %cst_12 = arith.constant dense<0.000000e+00> : vector<1xf32>
    %40 = vector.multi_reduction <add>, %39, %cst_12 [1, 2] : vector<1x16x1xf32> to vector<1xf32>
    %41 = vector.shape_cast %40 : vector<1xf32> to vector<1x1x1xf32>
    %42 = vector.extract %41[0, 0, 0] : f32 from vector<1x1x1xf32>
    %43 = arith.addf %36, %42 : f32
    %c0_13 = arith.constant 0 : index
    %44 = memref.load %arg6[%c0_13] : memref<2xf32, #tpu.memory_space<smem>>
    memref.store %43, %arg6[%c0_13] : memref<2xf32, #tpu.memory_space<smem>>
    %c1 = arith.constant 1 : index
    %45 = memref.load %arg6[%c1] : memref<2xf32, #tpu.memory_space<smem>>
    %46 = vector.shape_cast %19 : vector<16x1xf32> to vector<1x16x1xf32>
    %cst_14 = arith.constant dense<0.000000e+00> : vector<1xf32>
    %47 = vector.multi_reduction <add>, %46, %cst_14 [1, 2] : vector<1x16x1xf32> to vector<1xf32>
    %48 = vector.shape_cast %47 : vector<1xf32> to vector<1x1x1xf32>
    %49 = vector.extract %48[0, 0, 0] : f32 from vector<1x1x1xf32>
    %50 = arith.addf %45, %49 : f32
    %c1_15 = arith.constant 1 : index
    %51 = memref.load %arg6[%c1_15] : memref<2xf32, #tpu.memory_space<smem>>
    memref.store %50, %arg6[%c1_15] : memref<2xf32, #tpu.memory_space<smem>>
    %c0_i32_16 = arith.constant 0 : i32
    %52 = arith.cmpi eq, %arg1, %c0_i32_16 : i32
    %53 = arith.extui %52 : i1 to i32
    %c0_i32_17 = arith.constant 0 : i32
    %54 = arith.cmpi ne, %53, %c0_i32_17 : i32
    scf.if %54 {
      %55 = tpu.iota {dimensions = array<i32: 1>} : vector<1x8x128xi32>
      %56 = tpu.iota {dimensions = array<i32: 2>} : vector<1x8x128xi32>
      %c0_18 = arith.constant 0 : index
      %57 = memref.load %arg6[%c0_18] : memref<2xf32, #tpu.memory_space<smem>>
      %c1_19 = arith.constant 1 : index
      %58 = memref.load %arg6[%c1_19] : memref<2xf32, #tpu.memory_space<smem>>
      %c0_i32_20 = arith.constant 0 : i32
      %59 = vector.broadcast %c0_i32_20 : i32 to vector<1x8x128xi32>
      %60 = arith.cmpi eq, %55, %59 : vector<1x8x128xi32>
      %c0_i32_21 = arith.constant 0 : i32
      %61 = vector.broadcast %c0_i32_21 : i32 to vector<1x8x128xi32>
      %62 = arith.cmpi eq, %56, %61 : vector<1x8x128xi32>
      %63 = arith.andi %60, %62 : vector<1x8x128xi1>
      %c0_i32_22 = arith.constant 0 : i32
      %64 = vector.broadcast %c0_i32_22 : i32 to vector<1x8x128xi32>
      %65 = arith.cmpi eq, %55, %64 : vector<1x8x128xi32>
      %c1_i32_23 = arith.constant 1 : i32
      %66 = vector.broadcast %c1_i32_23 : i32 to vector<1x8x128xi32>
      %67 = arith.cmpi eq, %56, %66 : vector<1x8x128xi32>
      %68 = arith.andi %65, %67 : vector<1x8x128xi1>
      %cst_24 = arith.constant 0.000000e+00 : f32
      %69 = vector.broadcast %58 : f32 to vector<1x8x128xf32>
      %70 = vector.broadcast %cst_24 : f32 to vector<1x8x128xf32>
      %71 = arith.select %68, %69, %70 : vector<1x8x128xi1>, vector<1x8x128xf32>
      %72 = vector.broadcast %57 : f32 to vector<1x8x128xf32>
      %73 = arith.select %63, %72, %71 : vector<1x8x128xi1>, vector<1x8x128xf32>
      %c0_25 = arith.constant 0 : index
      %c0_26 = arith.constant 0 : index
      %c0_27 = arith.constant 0 : index
      %74 = vector.load %arg5[%c0_25, %c0_26, %c0_27] : memref<1x8x128xf32, #tpu.memory_space<vmem>>, vector<1x8x128xf32>
      tpu.vector_store %arg5[%c0_25, %c0_26, %c0_27], %73 {strides = array<i32>} : memref<1x8x128xf32, #tpu.memory_space<vmem>>, vector<1x8x128xf32>,
    } else {
    }
    return
  }
  func.func @transform_0(%arg0: i32, %arg1: i32) -> (i32, i32) {
    %c1_i32 = arith.constant 1 : i32
    %0 = arith.muli %arg0, %c1_i32 : i32
    %1 = arith.addi %0, %arg1 : i32
    %c1_i32_0 = arith.constant 1 : i32
    %2 = arith.minsi %1, %c1_i32_0 : i32
    %c0_i32 = arith.constant 0 : i32
    %c0_i32_1 = arith.constant 0 : i32
    return %2, %c0_i32 : i32, i32
  }
  func.func @transform_1(%arg0: i32, %arg1: i32) -> (i32, i32) {
    %c1_i32 = arith.constant 1 : i32
    %0 = arith.muli %arg0, %c1_i32 : i32
    %1 = arith.addi %0, %arg1 : i32
    %c1_i32_0 = arith.constant 1 : i32
    %2 = arith.minsi %1, %c1_i32_0 : i32
    %c0_i32 = arith.constant 0 : i32
    %c0_i32_1 = arith.constant 0 : i32
    return %2, %c0_i32 : i32, i32
  }
  func.func @transform_2(%arg0: i32, %arg1: i32) -> (i32, i32) {
    %c1_i32 = arith.constant 1 : i32
    %0 = arith.muli %arg0, %c1_i32 : i32
    %1 = arith.addi %0, %arg1 : i32
    %c1_i32_0 = arith.constant 1 : i32
    %2 = arith.minsi %1, %c1_i32_0 : i32
    %c0_i32 = arith.constant 0 : i32
    %c0_i32_1 = arith.constant 0 : i32
    return %2, %c0_i32 : i32, i32
  }
  func.func @transform_3(%arg0: i32, %arg1: i32) -> (i32, i32, i32) {
    %c0_i32 = arith.constant 0 : i32
    %c0_i32_0 = arith.constant 0 : i32
    %c0_i32_1 = arith.constant 0 : i32
    return %arg0, %c0_i32, %c0_i32_0 : i32, i32, i32
  }
}

</mosaic_0001>

<bundles_post_ra>
// kernel: tpu_custom_call.1
= control target key start
LH: loop header
LB: loop body
LE: loop exit
PB: predicated region body
PF: predicated region fallthrough
CT: control target
= control target key end

     0   :  { %8 = vsyncpa [#allocation4], 0  ;;  %s918_s0 = inlined_call_operand.vmem [shape: f32[21,4], index: 0, kind: input, shape index: {}]   ;;  %s919_s1 = inlined_call_operand.vmem [shape: s32[21,1], index: 1, kind: input, shape index: {}]   ;;  %s920_s2 = inlined_call_operand.vmem [shape: f32[21,1], index: 2, kind: input, shape index: {}]   ;;  %s921_s3 = inlined_call_operand.hbm [shape: f32[2,8,128], index: 3, kind: output, shape index: {}]  }
   0x1   :  { %10 = vsyncpa [#allocation4 + $0x1], 0  ;;  %s773_s12 = smov 0   ;;  %s775_s13 = smov 0  }
   0x2   :  { %s777_s14 = smov 0   ;;  %s779_s15 = smov 0  }
   0x3   :  { %s781_s16 = smov 0   ;;  %s783_s17 = smov 0  }
   0x4 LB: > { %s582_s18 = sadd.s32 4294967295, %s749_s17   ;;  %s583_s19 = sadd.s32 4294967294, %s749_s17   ;;  %s749_s17 = sphi %s783_s17, %s16_s17   ;;  %s745_s16 = sphi %s781_s16, %s928_s16   ;;  %s741_s15 = sphi %s779_s15, %s927_s15   ;;  %s737_s14 = sphi %s777_s14, %s926_s14   ;;  %s733_s13 = sphi %s775_s13, %s925_s13   ;;  %s729_s12 = sphi %s773_s12, %s924_s12  }
   0x5   : > { %s28_s20 = sadd.s32 1, %s745_s16  ;;  %s131_s21 = sadd.s32 1, %s737_s14 }
   0x6   : > { %p30_p0 = scmp.ge.s32.totalorder %s28_s20, 2  ;;  %p141_p1 = scmp.ne.s32.totalorder %s737_s14, %s733_s13 }
   0x7   : > { %p142_p2 = scmp.eq.s32.totalorder %s582_s18, 1  ;;  %p147_p3 = scmp.ne.s32.totalorder %s733_s13, %s729_s12 }
   0x8   : > { %s930_s20 = smov (%p30_p0, %s28_s20), 0  ;;  %p148_p5 = scmp.eq.s32.totalorder %s583_s19, 1 }
   0x9   : > { %p813_p4 = por %p142_p2, %p141_p1  ;;  %s128_s23 = ssub.s32 %s745_s16, %s930_s20 }
   0xa   : > { %p586_p6 = scmp.ge.s32.totalorder %s749_s17, 1  ;;  %p129_p7 = scmp.eq.s32.totalorder %s128_s23, 0 }
   0xb   : > { %p820_p8 = por %p148_p5, %p147_p3  ;;  %p235_p9 = scmp.lt.s32.totalorder %s749_s17, 3 }
   0xc   : > { %s826_s25 = scalar_select %p129_p7, %s737_s14, %s131_s21  }
   0xd   : > { %p236_p10 = pnand %p586_p6, %p235_p9 }
   0xe   : > { %p291_p11 = scmp.lt.s32.totalorder (!%p236_p10), %s741_s15, 1  ;;  %s594_s26 = sshll.u32 (!%p236_p10), %s741_s15, 4  ;;  %v366_v0 = vlaneseq (!%p236_p10)  ;;  %v751_v1 = vmov (!%p236_p10), 0   ;;  %vm382_vm2 = vcmask (!%p236_p10), 31744   ;;  %vm430_vm5 = vcmask (!%p236_p10), 7168  }
   0xf   : > { %239 = sbr.rel (%p236_p10) target bundleno = 584 (0x248), region = 32  ;;  %661 = vset.pattern.permute.xlu1 (!%p236_p10), %v751_v1  ;;  %662 = vset.pattern.permute.xlu0 (!%p236_p10), %v751_v1  ;;  %v369_v3 = vstv (!%p236_p10), %s594_s26  ;;  %s287_s18 = sand.u32 (!%p236_p10), 1, %s733_s13  }
  0x10   : > { %v831_v2 = vshrl.u32 (!%p236_p10), %v366_v0, 7  ;;  %v849_v22 = vand.u32 (!%p236_p10), 127, %v366_v0  ;;  %s587_s19 = sshll.u32 (!%p236_p10), %s287_s18, 3  ;;  %s598_s21 = sshll.u32 (!%p236_p10), %s741_s15, 7 }
  0x11   : > { %s289_s26 = scalar_lea.vmem (!%p236_p10), [#allocation3], %s587_s19  ;;  %s871_s4 = scalar_lea.hbm (!%p236_p10), %s921_s3, %s598_s21 }
  0x12   : > { %v368_v4 = vadd.s32 (!%p236_p10), 8, %v831_v2  ;;  %v370_v5 = vadd.s32 (!%p236_p10), %v369_v3, %v831_v2  ;;  %vm467_vm6 = vcmp.eq.s32.totalorder (!%p236_p10), %v831_v2, 0  ;;  %vm470_vm7 = vcmp.eq.s32.totalorder (!%p236_p10), %v849_v22, 1  ;;  %s752_s6 = smov (!%p236_p10), [#allocation3]  }
  0x13   : > { %vm468_vm8 = vcmp.eq.s32.totalorder (!%p236_p10), %v849_v22, 0  ;;  %vm471_vm9 = vmand (!%p236_p10), %vm467_vm6, %vm470_vm7  ;;  %s675_s7 = sshll.u32 (!%p236_p10), %s752_s6, 4  ;;  %s676_s7 = int_to_ptr.vmem [resolvable:$false] %s675_s7 }
  0x14   : > { %v371_v6 = vadd.s32 (!%p236_p10), %v369_v3, %v368_v4  ;;  %vm372_vm0 = vcmp.lt.s32.totalorder (!%p236_p10), %v370_v5, 21  ;;  %vm469_vm10 = vmand (!%p236_p10), %vm467_vm6, %vm468_vm8 }
  0x16   : > { %s292_s27 = scalar_select %p291_p11, %s741_s15, 1  ;;  %vm373_vm1 = vcmp.lt.s32.totalorder %v371_v6, 21 }
  0x17   : > { %s478_s15 = scalar_lea.sflag [#allocation4], %s287_s18 }
  0x18   : > { %s588_s28 = sshll.u32 %s292_s27, 1  ;;  %s491_s27 = sshll.u32 %s289_s26, 4  ;;  %s873_s27 = int_to_ptr.vmem [resolvable:$true] %s491_s27 }
  0x19   : > { %p298_p12 = scmp.lt.s32.totalorder %s588_s28, 2  ;;  %p678_p2 = scmp.lt.s32.totalorder %s873_s27, %s676_s7 }
  0x1b   : > { %s932_s28 = smov (!%p298_p12, %s588_s28), 2 }
  0x1c   : > { %s835_s29 = sshll.u32 %s932_s28, 3 }
  0x1d   : > { %s301_s5 = scalar_lea.vmem %s918_s0, %s835_s29  ;;  %s321_s8 = scalar_lea.vmem %s919_s1, %s835_s29 }
  0x1e   : > { %v358_v7 = vld [vmem:[%s301_s5] sm:$0xff]  ;;  %v359_v8 = vld [vmem:[%s301_s5 + $0x8] sm:$0xff]  ;;  %s341_s11 = scalar_lea.vmem %s920_s2, %s835_s29  ;;  %s671_s5 = scalar_lea.vmem %s873_s27, 128 }
  0x1f   : > { %v360_v9 = vld [vmem:[%s321_s8] sm:$0xff]  ;;  %v378_v10 = vsel %vm372_vm0, %v358_v7, 0.0  ;;  %v379_v11 = vsel %vm373_vm1, %v359_v8, 0.0  ;;  %v361_v13 = vld [vmem:[%s321_s8 + $0x8] sm:$0xff]  ;;  %p672_p13 = scmp.ne.s32.totalorder %s873_s27, %s671_s5  ;;  %s677_s8 = scalar_lea.vmem %s676_s7, 256 }
  0x20   : > { %410 = vperm.xlu1 %661, %v360_v9   ;;  %v383_v12 = vsel %vm382_vm2, %v378_v10, -inf  ;;  %v386_v14 = vsel %vm382_vm2, %v379_v11, -inf  ;;  %v362_v37 = vld [vmem:[%s341_s11] sm:$0xff]  ;;  %v363_v42 = vld [vmem:[%s341_s11 + $0x8] sm:$0xff]  ;;  %p679_p3 = scmp.lt.s32.totalorder %s677_s8, %s671_s5 }
  0x21   : > { %384 = vmax.xlane.f32.xlu0 %v383_v12  ;;  %v380_v43 = vsel %vm372_vm0, %v362_v37, 0.0  ;;  %v381_v45 = vsel %vm373_vm1, %v363_v42, 0.0  ;;  %p673_p0 = pnand %p672_p13, %p813_p4 }
  0x22   : > { %v447_v52 = vsel %vm430_vm5, %v380_v43, 0.0  ;;  %v448_v53 = vsel %vm430_vm5, %v381_v45, 0.0  ;;  %p680_p5 = por %p679_p3, %p678_p2 }
  0x23   : > { %v449_v55 = vadd.f32 %v448_v53, %v447_v52  ;;  %p674_p1 = pneg %p673_p0 }
  0x24   : > { %413 = vperm.xlu1 %661, %v361_v13  }
  0x25   : > { %387 = vmax.xlane.f32.xlu0 %v386_v14  ;;  %p681_p6 = pnand %p680_p5, %p674_p1 }
  0x9f   : > { %v411_v21 = vpop.permute.xlu1 %410 }
  0xa0   : > { %vm415_vm3 = vcmp.eq.s32.totalorder %v849_v22, %v411_v21 }
  0xa1   : > { %v417_v25 = vsel %vm415_vm3, %v378_v10, 0.0 }
  0xa2   : > { %v419_v27 = vsel %vm382_vm2, %v417_v25, 0.0 }
  0xa3   : > { %v414_v23 = vpop.permute.xlu1 %413 }
  0xa4   : > { %vm416_vm4 = vcmp.eq.s32.totalorder %v849_v22, %v414_v23 }
  0xa5   : > { %v418_v29 = vsel %vm416_vm4, %v379_v11, 0.0 }
  0xa6   : > { %v422_v31 = vsel %vm382_vm2, %v418_v29, 0.0 }
  0xae   : > { %v385_v15 = vpop.xlane.xlu0 %384 }
  0xaf   : > { %v389_v16 = vsub.f32 %v378_v10, %v385_v15 }
  0xb1   : > { %v391_v17 = vmul.f32 1.442695, %v389_v16 }
  0xb2   : > { %v388_v18 = vpop.xlane.xlu0 %387 }
  0xb3   : > { %663 = vpow2.f32 %v391_v17  ;;  %v390_v19 = vsub.f32 %v379_v11, %v388_v18 }
  0xb5   : > { %v393_v20 = vmul.f32 1.442695, %v390_v19 }
  0xb7   : > { %665 = vpow2.f32 %v393_v20 }
  0xbd   : > { %v664_v24 = vpop.eup %663 }
  0xbe   : > { %v395_v26 = vsel %vm382_vm2, %v664_v24, 0.0 }
  0xbf   : > { %396 = vadd.xlane.f32.xlu0 %v395_v26 }
  0xc1   : > { %v666_v28 = vpop.eup %665 }
  0xc2   : > { %v398_v30 = vsel %vm382_vm2, %v666_v28, 0.0 }
  0xc3   : > { %399 = vadd.xlane.f32.xlu1 %v398_v30  ;;  %420 = vadd.xlane.f32.xlu0 %v419_v27 }
  0xc7   : > { %423 = vadd.xlane.f32.xlu0 %v422_v31 }
 0x14c   : > { %v397_v32 = vpop.xlane.xlu0 %396 }
 0x14d   : > { %667 = vlog2.f32 %v397_v32 }
 0x150   : > { %v400_v33 = vpop.xlane.xlu1 %399  ;;  %v421_v36 = vpop.xlane.xlu0 %420 }
 0x151   : > { %669 = vlog2.f32 %v400_v33 }
 0x154   : > { %v424_v46 = vpop.xlane.xlu0 %423 }
 0x157   : > { %v668_v34 = vpop.eup %667 }
 0x158   : > { %v402_v35 = vmul.f32 0.6931472, %v668_v34 }
 0x15a   : > { %v405_v38 = vadd.f32 %v402_v35, %v385_v15 }
 0x15b   : > { %v670_v39 = vpop.eup %669 }
 0x15c   : > { %v404_v40 = vmul.f32 0.6931472, %v670_v39  ;;  %v426_v41 = vsub.f32 %v405_v38, %v421_v36 }
 0x15e   : > { %v406_v44 = vadd.f32 %v404_v40, %v388_v18  ;;  %v428_v47 = vmul.f32 %v426_v41, %v380_v43 }
 0x160   : > { %v427_v48 = vsub.f32 %v406_v44, %v424_v46  ;;  %v431_v50 = vsel %vm430_vm5, %v428_v47, 0.0 }
 0x162   : > { %v429_v49 = vmul.f32 %v427_v48, %v381_v45 }
 0x164   : > { %v432_v51 = vsel %vm430_vm5, %v429_v49, 0.0 }
 0x165   : > { %v433_v54 = vadd.f32 %v432_v51, %v431_v50 }
 0x167   : > { %434 = vadd.xlane.f32.xlu0 %v433_v54 }
 0x16b   : > { %450 = vadd.xlane.f32.xlu0 %v449_v55 }
 0x1f4   : > { %v435_v56 = vpop.xlane.xlu0 %434 }
 0x1f5   : > { %v436_v57 = vrot.slane %v435_v56, 4 }
 0x1f7   : > { %v437_v58 = vadd.f32 %v436_v57, %v435_v56 }
 0x1f8   : > { %v451_v59 = vpop.xlane.xlu0 %450 }
 0x1f9   : > { %v438_v60 = vrot.slane %v437_v58, 2  ;;  %v452_v61 = vrot.slane %v451_v59, 4 }
 0x1fb   : > { %v453_v62 = vadd.f32 %v452_v61, %v451_v59  ;;  %v439_v63 = vadd.f32 %v438_v60, %v437_v58 }
 0x1fd   : > { %v454_v0 = vrot.slane %v453_v62, 2  ;;  %v440_v1 = vrot.slane %v439_v63, 1 }
 0x1ff   : > { %v455_v3 = vadd.f32 %v454_v0, %v453_v62  ;;  %v441_v4 = vadd.f32 %v440_v1, %v439_v63 }
 0x201   : > { %601 = vpush %v441_v4  ;;  %v456_v5 = vrot.slane %v455_v3, 1 }
 0x203   : > { %v457_v6 = vadd.f32 %v456_v5, %v455_v3 }
 0x205   : > { %603 = vpush %v457_v6 }
 0x232   : > { %s602_s23 = spop %601 }
 0x233   : > { %v474_v8 = vstv %s602_s23 }
 0x236   : > { %s604_s28 = spop %603 }
 0x237   : > { %v472_v7 = vstv %s604_s28 }
 0x238   : > { %v473_v9 = vsel %vm471_vm9, %v472_v7, 0.0 }
 0x239   : > { %v475_v2 = vsel %vm469_vm10, %v474_v8, %v473_v9 }
 0x23a   : > { %476 = vst [vmem:[%s289_s26] sm:$0xff] %v475_v2 }
 0x23b   : > { %684 = shalt.err (!%p681_p6)
}
 0x23c   : > { %s685_s9 = scalar_lea.hbm %s871_s4, 128  ;;  %s689_s18 = scalar_lea.hbm %s921_s3, 256 }
 0x23d   : > { %p686_p7 = scmp.ne.s32.totalorder %s871_s4, %s685_s9  ;;  %p690_p11 = scmp.lt.u32.totalorder %s871_s4, %s921_s3 }
 0x23e   : > { %p691_p12 = scmp.lt.u32.totalorder %s689_s18, %s685_s9  ;;  %p693_p0 = scmp.lt.u32.totalorder %s685_s9, %s871_s4 }
 0x23f   : > { %p687_p9 = pnand %p686_p7, %p813_p4 }
 0x240   : > { %p692_p13 = por %p691_p12, %p690_p11 }
 0x241   : > { %p688_p10 = pneg %p687_p9 }
 0x242   : > { %p694_p1 = por %p693_p0, %p692_p13 }
 0x244   : > { %p695_p2 = pnand %p694_p1, %p688_p10 }
 0x246   : > { %698 = shalt.err (!%p695_p2)
}
 0x247   : > { %605 = dma.vmem_to_hbm [thread:$0]  (%p813_p4), %s873_s27, 128, %s871_s4, %s478_s15  }
 0x248 PF: > { %p611_p3 = scmp.ge.s32.totalorder %s749_s17, 2  ;;  %s503_s23 = sand.u32 1, %s729_s12  }
 0x249   : > { %s504_s26 = scalar_lea.sflag [#allocation4], %s503_s23 }
 0x24a   : > { %p608_p5 = pnand %p611_p3, %p820_p8 }
 0x24c   : > { %724 = dma.done.wait (!%p608_p5), %s504_s26, 128  }
 0x24d   : > { %726 = vsyncadd (!%p608_p5), %s504_s26, 4294967168  ;;  %s16_s17 = sadd.s32 1, %s749_s17   ;;  %s924_s12 = smov %s733_s13 }
 0x24e   : > { %p13_p6 = scmp.ge.s32.totalorder %s16_s17, 4   ;;  %s925_s13 = smov %s737_s14 }
 0x24f   : > { %s926_s14 = smov %s826_s25  ;;  %s927_s15 = smov %s745_s16 }
 0x250   : > { %s928_s16 = smov %s930_s20  ;;  %15 = sbr.rel (!%p13_p6) target bundleno = 4 (0x4), region = 85 }
 0x257   :  { %509 = vsyncpa [#allocation4], 1 }
 0x258   :  { %511 = vsyncpa [#allocation4 + $0x1], 1 }

</bundles_post_ra>
